<compile_context>
chip_gen: v5e
topology: v5e:2x2
jax: 0.10.0
libtpu: 0.0.40
codegen_flags: <defaults>
</compile_context>

<pallas_src>
import functools

import jax
import jax.numpy as jnp
from jax.experimental import pallas as pl
from jax.experimental.pallas import tpu as pltpu


# ----------------------- roll-convention probe (once) ---------------------- #

@functools.lru_cache(maxsize=None)
def _roll_is_numpy_convention():
    """True iff pltpu.roll(x, s, axis) matches jnp.roll(x, s, axis) on this
    backend (rolled[i] = x[(i - s) % N]).  Checked once with a tiny kernel so
    the shifted-accumulate conv below is direction-safe."""
    def k(x_ref, o_ref):
        o_ref[...] = pltpu.roll(x_ref[...], 1, 1)

    x = jnp.broadcast_to(jnp.arange(128, dtype=jnp.float32), (8, 128))
    y = pl.pallas_call(
        k, out_shape=jax.ShapeDtypeStruct((8, 128), jnp.float32))(x)
    return bool(y[0, 0] == 127.0)


# ------------------- 7x7 "same" conv as roll coefficients ------------------ #

def _conv7_roll_coefs(k2d, H, W, bn_scale):
    """Per-tap coefficient planes + static lane-roll shifts for a KxK 'same'
    zero-padded cross-correlation on an HxW image flattened to HW lanes:

        conv[b, p] = sum_j coef[j, p] * roll(cmean, shifts[j], lanes)[b, p]

    coef[j, p] is zero where tap j falls outside the image (zero padding) and
    already carries the eval-mode BN scale (review: fold BN scale in wrapper).
    Only K*K*HW coefficients -- replaces the old dense (HW, HW) matrix.
    """
    K = int(k2d.shape[0])
    R = K // 2
    HW = H * W
    p = jnp.arange(HW)
    ph, pw = p // W, p % W
    sign = -1 if _roll_is_numpy_convention() else 1
    coefs, shifts = [], []
    for dh in range(-R, R + 1):
        for dw in range(-R, R + 1):
            valid = ((ph + dh >= 0) & (ph + dh < H)
                     & (pw + dw >= 0) & (pw + dw < W))
            coefs.append(jnp.where(valid, k2d[dh + R, dw + R] * bn_scale, 0.0))
            shifts.append((sign * (dh * W + dw)) % HW)
    return jnp.stack(coefs, 0).astype(jnp.float32), tuple(shifts)


# --------------------------- fused CBAM kernel ----------------------------- #

def _make_cbam_kernel(shifts):
    """Fused channel gate + spatial gate for a (BT, C, HW) tile, all in VMEM.
    `shifts` are the static lane-roll amounts matching _conv7_roll_coefs."""

    def kernel(x_ref, w1t_ref, b1_ref, w2t_ref, b2_ref, coef_ref, bnsh_ref,
               out_ref):
        # ---- channel gate: avg-pool(HW) -> Linear -> ReLU -> Linear -> sigmoid
        # (means occupy the XLU; at production tile sizes the HW avg-pool can
        #  be folded into an MXU matmul against a ones/HW column -- scale-up note)
        avg = jnp.mean(x_ref[...].astype(jnp.float32), axis=2)           # (BT, C)
        h = jnp.dot(avg, w1t_ref[...].astype(jnp.float32),
                    preferred_element_type=jnp.float32) + b1_ref[...]    # (BT, Cr)
        h = jnp.maximum(h, 0.0)
        att = jnp.dot(h, w2t_ref[...].astype(jnp.float32),
                      preferred_element_type=jnp.float32) + b2_ref[...]  # (BT, C)
        ch_scale = jax.nn.sigmoid(att)                                   # (BT, C)

        # Stage x_cg through out_ref (VMEM) instead of holding x and x_cg live
        # in vregs at the same time (review: removes the 64-vreg dual live-range).
        out_ref[...] = (x_ref[...].astype(jnp.float32)
                        * ch_scale[:, :, None]).astype(out_ref.dtype)

        # ---- spatial gate: ChannelPool(mean over C) -> 7x7 conv -> sigmoid
        cmean = jnp.mean(out_ref[...].astype(jnp.float32), axis=1)       # (BT, HW)
        conv = jnp.zeros_like(cmean)
        for j, sh in enumerate(shifts):                                  # 49 taps
            c = coef_ref[j, :].astype(jnp.float32)                       # (HW,)
            r = cmean if sh == 0 else pltpu.roll(cmean, sh, 1)           # XLU roll
            conv = conv + c[None, :] * r
        s = jax.nn.sigmoid(conv + bnsh_ref[0])                           # (BT, HW)

        out_ref[...] = (out_ref[...].astype(jnp.float32)
                        * s[:, None, :]).astype(out_ref.dtype)

    return kernel


# ------------------------------ wrapper ------------------------------------ #

def cbam_forward(feat, w1, b1, w2, b2, conv_w, bn_scale, bn_shift,
                 *, batch_tile=None):
    """CBAM (avg-pool channel gate + mean-pool 7x7 spatial gate) on NCHW `feat`
    via one fused Pallas kernel (lane-dense (BT, C, HW) blocks)."""
    B, C, H, W = feat.shape
    HW = H * W
    Cr = w1.shape[0]
    BT = B if batch_tile is None else batch_tile
    assert B % BT == 0

    x2d = feat.reshape(B, C, HW)                      # HW on the lane axis
    w1t = w1.T.astype(jnp.bfloat16)                   # (C, Cr)
    w2t = w2.T.astype(jnp.bfloat16)                   # (Cr, C)
    b1r = b1.reshape(1, Cr).astype(jnp.float32)
    b2r = b2.reshape(1, C).astype(jnp.float32)
    coef, shifts = _conv7_roll_coefs(conv_w, H, W, bn_scale)
    coef = coef.astype(jnp.bfloat16)                  # (K*K, HW) ~25 KiB
    bnsh = jnp.asarray([bn_shift], jnp.float32)       # BN shift only (scale folded)

    # Grid-invariant operands (w1t, b1r, w2t, b2r, coef) now total ~30 KiB, so
    # default double-buffering costs ~30 KiB of VMEM -- negligible; no
    # pipeline_mode override or explicit vmem_limit_bytes needed at this size.
    out2d = pl.pallas_call(
        _make_cbam_kernel(shifts),
        out_shape=jax.ShapeDtypeStruct((B, C, HW), x2d.dtype),
        grid=(B // BT,),
        in_specs=[
            pl.BlockSpec((BT, C, HW), lambda b: (b, 0, 0)),
            pl.BlockSpec((C, Cr), lambda b: (0, 0)),
            pl.BlockSpec((1, Cr), lambda b: (0, 0)),
            pl.BlockSpec((Cr, C), lambda b: (0, 0)),
            pl.BlockSpec((1, C), lambda b: (0, 0)),
            pl.BlockSpec((coef.shape[0], HW), lambda b: (0, 0)),
            pl.BlockSpec(memory_space=pltpu.MemorySpace.SMEM),  # BN shift (1,)
        ],
        out_specs=pl.BlockSpec((BT, C, HW), lambda b: (b, 0, 0)),
        compiler_params=pltpu.CompilerParams(
            dimension_semantics=("parallel",)),
    )(x2d, w1t, b1r, w2t, b2r, coef, bnsh)
    return out2d.reshape(B, C, H, W)


# --------------------- Selectivity conv trunk (XLA) ------------------------ #

def _conv2d(x, w, b=None, *, padding=0, dilation=1):
    y = jax.lax.conv_general_dilated(
        x, w, (1, 1), ((padding, padding), (padding, padding)),
        rhs_dilation=(dilation, dilation),
        dimension_numbers=("NCHW", "OIHW", "NCHW"))
    if b is not None:
        y = y + b[None, :, None, None]
    return y


def selectivity_trunk(x, p, *, rate1=3, rate2=5):
    """conv stem + 4 CCL stages (eval-mode shared BN), concat along channels.
    Standard dense convolutions -> evaluated with XLA convs; emits bf16 so the
    CBAM kernel's input HBM traffic is halved (review item)."""
    def bn_relu(z, sc, sh):
        return jnp.maximum(z * sc[None, :, None, None] + sh[None, :, None, None], 0.0)

    y = bn_relu(_conv2d(x, p["stem_w"], p["stem_b"], padding=1),
                p["stem_bn_sc"], p["stem_bn_sh"])

    def ccl(z, s):
        local = (_conv2d(z, s["la_w"], s["la_b"])
                 + _conv2d(z, s["lb_w"], s["lb_b"], padding=1))
        context = (_conv2d(z, s["ca_w"], s["ca_b"], padding=rate1, dilation=rate1)
                   + _conv2d(z, s["cb_w"], s["cb_b"], padding=rate2, dilation=rate2))
        return bn_relu(local - context, p["ccl_bn_sc"], p["ccl_bn_sh"])

    c1 = ccl(y, p["s1"])
    c2 = ccl(c1, p["s2"])
    c3 = ccl(c2, p["s3"])
    c4 = ccl(c3, p["s4"])
    return jnp.concatenate((c1, c2, c3, c4), axis=1).astype(jnp.bfloat16)


# ------------------------------ reference ---------------------------------- #

def cbam_reference(feat, w1, b1, w2, b2, conv_w, bn_scale, bn_shift):
    x = feat.astype(jnp.float32)
    avg = x.mean(axis=(2, 3))                                  # (B, C)
    h = jnp.maximum(avg @ w1.T + b1, 0.0)                      # (B, Cr)
    att = h @ w2.T + b2                                        # (B, C)
    scale = jax.nn.sigmoid(att)[:, :, None, None]
    x_cg = x * scale
    cmean = x_cg.mean(axis=1, keepdims=True)                   # (B, 1, H, W)
    P = (conv_w.shape[0] - 1) // 2
    conv = jax.lax.conv_general_dilated(
        cmean, conv_w[None, None, :, :], (1, 1), ((P, P), (P, P)),
        dimension_numbers=("NCHW", "OIHW", "NCHW"))
    y = conv * bn_scale + bn_shift
    return x_cg * jax.nn.sigmoid(y)


# -------------------------------- main -------------------------------------- #

if __name__ == "__main__":
    planes = 64                         # Selectivity(planes)
    B, H, W = 2, 16, 16
    inplanes, outplanes = planes, planes // 4
    C = inplanes                        # CBAM gate_channels
    Cr = max(1, C // 16)                # CBAM reduction_ratio = 16 (module default)
    K = 7                               # spatial-gate conv kernel size

    key = jax.random.PRNGKey(0)
    keys = iter(jax.random.split(key, 64))

    def rnd(shape, scale=0.1):
        return scale * jax.random.normal(next(keys), shape, jnp.float32)

    x = jax.random.normal(next(keys), (B, inplanes, H, W), jnp.float32)

    # eval-mode BatchNorm folded to scale/shift (PyTorch default running stats)
    eps = 1e-5
    bn_sc = jnp.full((outplanes,), 1.0 / (1.0 + eps) ** 0.5, jnp.float32)
    bn_sh = jnp.zeros((outplanes,), jnp.float32)

    def conv_params():
        return {"la_w": rnd((outplanes, outplanes, 1, 1)), "la_b": rnd((outplanes,)),
                "lb_w": rnd((outplanes, outplanes, 3, 3)), "lb_b": rnd((outplanes,)),
                "ca_w": rnd((outplanes, outplanes, 3, 3)), "ca_b": rnd((outplanes,)),
                "cb_w": rnd((outplanes, outplanes, 3, 3)), "cb_b": rnd((outplanes,))}

    trunk = {"stem_w": rnd((outplanes, inplanes, 3, 3)), "stem_b": rnd((outplanes,)),
             "stem_bn_sc": bn_sc, "stem_bn_sh": bn_sh,
             "ccl_bn_sc": bn_sc, "ccl_bn_sh": bn_sh,
             "s1": conv_params(), "s2": conv_params(),
             "s3": conv_params(), "s4": conv_params()}

    # CBAM parameters (PyTorch shapes: Linear weight = (out, in))
    w1 = rnd((Cr, C))
    b1 = rnd((Cr,))
    w2 = rnd((C, Cr))
    b2 = rnd((C,))
    conv_w = rnd((K, K))                                  # Conv2d(1,1,7) squeezed
    bn_scale = 1.0 / (1.0 + eps) ** 0.5                   # gamma=1, running_var=1
    bn_shift = 0.0                                        # beta=0, running_mean=0

    feat = selectivity_trunk(x, trunk)                    # (B, C, H, W) bf16, XLA
    out = cbam_forward(feat, w1, b1, w2, b2, conv_w, bn_scale, bn_shift)
    out = jax.block_until_ready(out)

    ref = cbam_reference(feat, w1, b1, w2, b2, conv_w, bn_scale, bn_shift)
    assert out.shape == (B, C, H, W)
    assert out.dtype == jnp.bfloat16
    max_err = jnp.max(jnp.abs(out.astype(jnp.float32) - ref))
    assert jnp.allclose(out.astype(jnp.float32), ref, atol=3e-2, rtol=3e-2), (
        f"mismatch vs reference (max abs err {max_err})")

    print("KERNEL_OK")
</pallas_src>

<mosaic_0001>
module attributes {stable_mosaic.version = 11 : i64} {
  func.func @k(%arg0: memref<8x128xf32, #tpu.memory_space<vmem>>, %arg1: memref<8x128xf32, #tpu.memory_space<vmem>>) attributes {dimension_semantics = [], scalar_prefetch = 0 : i64, scratch_operands = 0 : i64, tpu.core_type = #tpu.core_type<tc>} {
    %c0 = arith.constant 0 : index
    %c0_0 = arith.constant 0 : index
    %0 = vector.load %arg0[%c0, %c0_0] : memref<8x128xf32, #tpu.memory_space<vmem>>, vector<8x128xf32>
    %c1_i32 = arith.constant 1 : i32
    %1 = tpu.dynamic_rotate %0 by %c1_i32 dim 1 : vector<8x128xf32>, i32 -> vector<8x128xf32>
    %c0_1 = arith.constant 0 : index
    %c0_2 = arith.constant 0 : index
    %2 = vector.load %arg1[%c0_1, %c0_2] : memref<8x128xf32, #tpu.memory_space<vmem>>, vector<8x128xf32>
    tpu.vector_store %arg1[%c0_1, %c0_2], %1 {strides = array<i32>} : memref<8x128xf32, #tpu.memory_space<vmem>>, vector<8x128xf32>,
    return
  }
}

</mosaic_0001>

<bundles_post_ra>
// kernel: tpu_custom_call.1
= control target key start
LH: loop header
LB: loop body
LE: loop exit
PB: predicated region body
PF: predicated region fallthrough
CT: control target
= control target key end

     0   :  { %6 = vsyncpa [#allocation3], 0  ;;  %s118_s0 = inlined_call_operand.hbm [shape: f32[8,128], index: 0, kind: input, shape index: {}]   ;;  %s119_s1 = inlined_call_operand.hbm [shape: f32[8,128], index: 1, kind: output, shape index: {}]  }
   0x1   :  { %7 = vsyncpa [#allocation4], 0  ;;  %s13_s8 = sshll.u32 %s118_s0, 4  ;;  %s99_s9 = smov [#allocation2]   ;;  %s14_s8 = int_to_ptr.hbm [resolvable:$true] %s13_s8 }
   0x2   :  { %s15_s10 = sshll.u32 %s99_s9, 4  ;;  %s16_s10 = int_to_ptr.vmem [resolvable:$true] %s15_s10 }
   0x3   :  { %18 = dma.hbm_to_vmem [thread:$0]  %s14_s8, 128, %s16_s10, [#allocation3]  }
   0x4   :  { %95 = dma.done.wait [#allocation3], 128  }
   0x5   :  { %96 = vsyncadd [#allocation3], 4294967168  ;;  %v23_v0 = vld [vmem:[#allocation2] sm:$0xff]  ;;  %s100_s11 = smov 1   ;;  %s101_s12 = smov [#allocation5]  }
   0x6   :  { %24 = vrot.lane.b32.xlu0 %v23_v0, %s100_s11  ;;  %s32_s13 = sshll.u32 %s101_s12, 4  ;;  %s34_s16 = sshll.u32 %s119_s1, 4  ;;  %s33_s13 = int_to_ptr.vmem [resolvable:$true] %s32_s13  ;;  %s35_s16 = int_to_ptr.hbm [resolvable:$true] %s34_s16 }
  0x78   :  { %v25_v1 = vpop.permute.xlu0 %24 }
  0x79   :  { %26 = vst [vmem:[#allocation5] sm:$0xff] %v25_v1 }
  0x7a   :  { %37 = dma.vmem_to_hbm [thread:$0]  %s33_s13, 128, %s35_s16, [#allocation4]  }
  0x7b   :  { %97 = dma.done.wait [#allocation4], 128  }
  0x7c   :  { %98 = vsyncadd [#allocation4], 4294967168 }
  0x7d   :  { %42 = vsyncpa [#allocation3], 1 }
  0x7e   :  { %43 = vsyncpa [#allocation4], 1 }

</bundles_post_ra>
